<compile_context>
chip_gen: v7x
topology: tpu7x:2x2x1
jax: 0.10.0
libtpu: 0.0.40
codegen_flags: <defaults>
</compile_context>

<pallas_src>
import functools

import jax
import jax.numpy as jnp
from jax.experimental import pallas as pl
from jax.experimental.pallas import tpu as pltpu


def _round_up(x, m):
    return (x + m - 1) // m * m


def _pick_row_tile(hw, cap=128):
    """Largest multiple of 8 that is <= cap and divides hw (fallback: hw)."""
    tm = min(cap, hw)
    tm -= tm % 8
    while tm >= 8:
        if hw % tm == 0:
            return tm
        tm -= 8
    return hw


# ----------------------------------------------------------------------------
# Kernel 1: conv stem (im2col matmul) + bias + ReLU + global average pool,
#           fused.  grid = (batch, spatial row-tiles).
# ----------------------------------------------------------------------------
def conv_pool_kernel(patches_ref, w_ref, b_ref, pooled_ref, acc_ref, *, inv_hw):
    t = pl.program_id(1)

    @pl.when(t == 0)
    def _():
        acc_ref[...] = jnp.zeros_like(acc_ref)

    x = patches_ref[0]                                    # (TM, K_pad)  bf16
    y = jnp.dot(x, w_ref[...], preferred_element_type=jnp.float32)
    y = jnp.maximum(y + b_ref[...], 0.0)                  # bias + ReLU (f32)
    acc_ref[...] += jnp.sum(y, axis=0, keepdims=True)     # (1, C_pad)

    @pl.when(t == pl.num_programs(1) - 1)
    def _():
        pooled = acc_ref[...] * inv_hw                    # adaptive avg-pool 1x1
        pooled_ref[...] = jnp.broadcast_to(
            pooled.reshape(1, 1, -1), pooled_ref.shape)


def conv_relu_avgpool(patches, w_conv, b_conv, *, hw, tm):
    """patches: (B, HW, K_pad) bf16; w_conv: (K_pad, C_pad) bf16;
    b_conv: (1, C_pad) f32.  Returns pooled features (B, C_pad) f32."""
    B, HW, K_pad = patches.shape
    C_pad = w_conv.shape[1]
    n_t = HW // tm
    kernel = functools.partial(conv_pool_kernel, inv_hw=1.0 / hw)
    pooled_slab = pl.pallas_call(
        kernel,
        out_shape=jax.ShapeDtypeStruct((B, 8, C_pad), jnp.float32),
        grid_spec=pltpu.PrefetchScalarGridSpec(
            num_scalar_prefetch=0,
            grid=(B, n_t),
            in_specs=[
                pl.BlockSpec((1, tm, K_pad), lambda b, t: (b, t, 0)),
                pl.BlockSpec((K_pad, C_pad), lambda b, t: (0, 0)),
                pl.BlockSpec((1, C_pad), lambda b, t: (0, 0)),
            ],
            out_specs=pl.BlockSpec((1, 8, C_pad), lambda b, t: (b, 0, 0)),
            scratch_shapes=[pltpu.VMEM((1, C_pad), jnp.float32)],
        ),
        compiler_params=pltpu.CompilerParams(
            dimension_semantics=("parallel", "arbitrary"),
            vmem_limit_bytes=32 * 1024 * 1024,
        ),
    )(patches, w_conv, b_conv)
    # Row 0 of the 8-sublane slab holds the pooled vector (the slab only
    # exists to keep the output BlockSpec (8, 128)-aligned / unmasked).
    return pooled_slab[:, 0, :]


# ----------------------------------------------------------------------------
# Kernel 2: Linear + BatchNorm1d (training-mode batch statistics).  Tiny.
# ----------------------------------------------------------------------------
def linear_bn_kernel(x_ref, w_ref, b_ref, gamma_ref, beta_ref, out_ref):
    # Linear: y = x @ W + b   (W pre-transposed to (C_pad, E_pad)).
    y = jnp.dot(x_ref[...], w_ref[...],
                preferred_element_type=jnp.float32) + b_ref[...]
    # BatchNorm1d, training mode: batch mean, biased batch variance, eps=1e-5.
    mean = jnp.mean(y, axis=0, keepdims=True)
    var = jnp.mean(jnp.square(y - mean), axis=0, keepdims=True)
    y_hat = (y - mean) * jax.lax.rsqrt(var + 1e-5)
    out_ref[...] = gamma_ref[...] * y_hat + beta_ref[...]


def linear_bn(pooled, w_lin, b_lin, gamma, beta):
    B, C_pad = pooled.shape
    E_pad = w_lin.shape[1]
    return pl.pallas_call(
        linear_bn_kernel,
        out_shape=jax.ShapeDtypeStruct((B, E_pad), jnp.float32),
        grid=(1,),
        in_specs=[
            pl.BlockSpec((B, C_pad), lambda i: (0, 0)),
            pl.BlockSpec((C_pad, E_pad), lambda i: (0, 0)),
            pl.BlockSpec((1, E_pad), lambda i: (0, 0)),
            pl.BlockSpec((1, E_pad), lambda i: (0, 0)),
            pl.BlockSpec((1, E_pad), lambda i: (0, 0)),
        ],
        out_specs=pl.BlockSpec((B, E_pad), lambda i: (0, 0)),
        compiler_params=pltpu.CompilerParams(
            dimension_semantics=("arbitrary",),
        ),
    )(pooled, w_lin, b_lin, gamma, beta)


# ----------------------------------------------------------------------------
# Glue (plain JAX): layout conversion + im2col + padding
# ----------------------------------------------------------------------------
def im2col_3x3_same(x_nhwc):
    # TODO(synk): fold the 3x3 shifts into the kernel (9 accumulated matmuls
    # over pl.ds-shifted windows) to avoid the 9x im2col duplication in HBM.
    B, H, W, C = x_nhwc.shape
    xp = jnp.pad(x_nhwc, ((0, 0), (1, 1), (1, 1), (0, 0)))
    cols = [xp[:, dh:dh + H, dw:dw + W, :]
            for dh in range(3) for dw in range(3)]
    patches = jnp.concatenate(cols, axis=-1)              # (B, H, W, 9*C)
    return patches.reshape(B, H * W, 9 * C)


@jax.jit
def enc_forward(images_nchw, params):
    """images_nchw: (B, Cin, H, W) float32 (PyTorch layout)."""
    B, Cin, H, W = images_nchw.shape
    C_feat = params["w_conv"].shape[1]
    E = params["w_lin"].shape[1]
    HW = H * W
    K = 9 * Cin
    K_pad = _round_up(K, 128)
    C_pad = _round_up(C_feat, 128)
    E_pad = _round_up(E, 128)

    # ---- frozen conv stem (stand-in backbone) with fused average pool ----
    x_nhwc = jnp.transpose(images_nchw, (0, 2, 3, 1))     # NCHW -> NHWC
    patches = im2col_3x3_same(x_nhwc)                     # (B, HW, K)
    patches = jnp.pad(patches, ((0, 0), (0, 0), (0, K_pad - K)))
    patches = patches.astype(jnp.bfloat16)                # bf16 MXU operand
    w_conv = jnp.pad(params["w_conv"],
                     ((0, K_pad - K), (0, C_pad - C_feat))).astype(jnp.bfloat16)
    b_conv = jnp.pad(params["b_conv"], ((0, 0), (0, C_pad - C_feat)))

    tm = _pick_row_tile(HW, cap=128)   # raise cap (512-1024) for real image sizes
    pooled_pad = conv_relu_avgpool(patches, w_conv, b_conv, hw=HW, tm=tm)

    # ---- Linear + BatchNorm1d head (exact, f32) ----
    w_lin = jnp.pad(params["w_lin"], ((0, C_pad - C_feat), (0, E_pad - E)))
    b_lin = jnp.pad(params["b_lin"], ((0, 0), (0, E_pad - E)))
    gamma = jnp.pad(params["gamma"], ((0, 0), (0, E_pad - E)))
    beta = jnp.pad(params["beta"], ((0, 0), (0, E_pad - E)))
    flat_pad = linear_bn(pooled_pad, w_lin, b_lin, gamma, beta)

    # Match PyTorch `features` shape (B, C_feat, 1, 1) from ResNet[:-1].
    features = pooled_pad[:, :C_feat].reshape(B, C_feat, 1, 1)
    flat_features = flat_pad[:, :E]
    # TODO(synk): BatchNorm1d running_mean/running_var updates (momentum=0.01)
    # are a training-mode side effect and are not reproduced.
    return features, flat_features


def init_params(key, cin, c_feat, embed):
    k1, k2, k3, k4 = jax.random.split(key, 4)
    return {
        # conv weight in im2col layout: (3*3*Cin, C_feat)
        "w_conv": 0.1 * jax.random.normal(k1, (9 * cin, c_feat), jnp.float32),
        "b_conv": 0.1 * jax.random.normal(k2, (1, c_feat), jnp.float32),
        # linear weight pre-transposed: (C_feat, embed) (torch stores (embed, C_feat))
        "w_lin": 0.1 * jax.random.normal(k3, (c_feat, embed), jnp.float32),
        "b_lin": 0.1 * jax.random.normal(k4, (1, embed), jnp.float32),
        # BatchNorm1d affine params (torch init: gamma=1, beta=0)
        "gamma": jnp.ones((1, embed), jnp.float32),
        "beta": jnp.zeros((1, embed), jnp.float32),
    }


if __name__ == "__main__":
    B, Cin, H, W = 2, 3, 16, 16
    C_feat, embed = 32, 16        # stand-ins for resnet.fc.in_features / embed_size

    key = jax.random.PRNGKey(0)
    k_img, k_par = jax.random.split(key)
    images = jax.random.normal(k_img, (B, Cin, H, W), jnp.float32)
    params = init_params(k_par, Cin, C_feat, embed)

    features, flat_features = enc_forward(images, params)
    jax.block_until_ready((features, flat_features))

    assert features.shape == (B, C_feat, 1, 1)
    assert flat_features.shape == (B, embed)
    assert bool(jnp.all(jnp.isfinite(features)))
    assert bool(jnp.all(jnp.isfinite(flat_features)))

    # Loose self-check of the fused conv+ReLU+avgpool path against a pure-JAX
    # reference (kernel uses bf16 MXU operands -> ~1e-2 level tolerance).
    x_nhwc = jnp.transpose(images, (0, 2, 3, 1))
    pat = im2col_3x3_same(x_nhwc)
    conv_ref = jnp.maximum(
        jnp.einsum("bmk,kc->bmc", pat, params["w_conv"],
                   precision=jax.lax.Precision.HIGHEST) + params["b_conv"], 0.0)
    pooled_ref = jnp.mean(conv_ref, axis=1)
    assert jnp.allclose(features.reshape(B, C_feat), pooled_ref,
                        rtol=5e-2, atol=5e-2)

    print("KERNEL_OK")
</pallas_src>

<mosaic_0001>
module attributes {stable_mosaic.version = 11 : i64} {
  func.func @conv_pool_kernel(%arg0: i32, %arg1: i32, %arg2: memref<1x128x128xbf16, #tpu.memory_space<vmem>>, %arg3: memref<128x128xbf16, #tpu.memory_space<vmem>>, %arg4: memref<1x128xf32, #tpu.memory_space<vmem>>, %arg5: memref<1x8x128xf32, #tpu.memory_space<vmem>>, %arg6: memref<1x128xf32, #tpu.memory_space<vmem>>) attributes {dimension_semantics = [#tpu.dimension_semantics<parallel>, #tpu.dimension_semantics<arbitrary>], iteration_bounds = array<i64: 2, 2>, scalar_prefetch = 0 : i64, scratch_operands = 1 : i64, tpu.core_type = #tpu.core_type<tc>, window_params = [{transform_indices = @transform_0, window_bounds = array<i64: 1, 128, 128>}, {pipeline_mode = #tpu.pipeline_mode<synchronous>, transform_indices = @transform_1, window_bounds = array<i64: 128, 128>}, {pipeline_mode = #tpu.pipeline_mode<synchronous>, transform_indices = @transform_2, window_bounds = array<i64: 1, 128>}, {transform_indices = @transform_3, window_bounds = array<i64: 1, 8, 128>}]} {
    %c0_i32 = arith.constant 0 : i32
    %0 = arith.cmpi eq, %arg1, %c0_i32 : i32
    %1 = arith.extui %0 : i1 to i32
    %c0_i32_0 = arith.constant 0 : i32
    %2 = arith.cmpi ne, %1, %c0_i32_0 : i32
    scf.if %2 {
      %cst_14 = arith.constant 0.000000e+00 : f32
      %20 = vector.broadcast %cst_14 : f32 to vector<1x128xf32>
      %c0_15 = arith.constant 0 : index
      %c0_16 = arith.constant 0 : index
      %21 = vector.load %arg6[%c0_15, %c0_16] : memref<1x128xf32, #tpu.memory_space<vmem>>, vector<1x128xf32>
      tpu.vector_store %arg6[%c0_15, %c0_16], %20 {strides = array<i32>} : memref<1x128xf32, #tpu.memory_space<vmem>>, vector<1x128xf32>,
    } else {
    }
    %c0 = arith.constant 0 : index
    %c0_1 = arith.constant 0 : index
    %c0_2 = arith.constant 0 : index
    %3 = vector.load %arg2[%c0, %c0_1, %c0_2] : memref<1x128x128xbf16, #tpu.memory_space<vmem>>, vector<1x128x128xbf16>
    %4 = vector.shape_cast %3 : vector<1x128x128xbf16> to vector<128x128xbf16>
    %c0_3 = arith.constant 0 : index
    %c0_4 = arith.constant 0 : index
    %5 = vector.load %arg3[%c0_3, %c0_4] : memref<128x128xbf16, #tpu.memory_space<vmem>>, vector<128x128xbf16>
    %cst = arith.constant dense<0.000000e+00> : vector<128x128xf32>
    %6 = tpu.matmul %4, %5, %cst {dimension_numbers = #tpu.dot_dimension_numbers<[1], [0], [0], [1], [0, 0, 1, 1], [], []>} : vector<128x128xbf16>, vector<128x128xbf16>, vector<128x128xf32> -> vector<128x128xf32>
    %c0_5 = arith.constant 0 : index
    %c0_6 = arith.constant 0 : index
    %7 = vector.load %arg4[%c0_5, %c0_6] : memref<1x128xf32, #tpu.memory_space<vmem>>, vector<1x128xf32>
    %8 = vector.broadcast %7 : vector<1x128xf32> to vector<128x128xf32>
    %9 = arith.addf %6, %8 : vector<128x128xf32>
    %cst_7 = arith.constant 0.000000e+00 : f32
    %10 = vector.broadcast %cst_7 : f32 to vector<128x128xf32>
    %11 = arith.maximumf %9, %10 : vector<128x128xf32>
    %c0_8 = arith.constant 0 : index
    %c0_9 = arith.constant 0 : index
    %12 = vector.load %arg6[%c0_8, %c0_9] : memref<1x128xf32, #tpu.memory_space<vmem>>, vector<1x128xf32>
    %cst_10 = arith.constant dense<0.000000e+00> : vector<128xf32>
    %13 = vector.multi_reduction <add>, %11, %cst_10 [0] : vector<128x128xf32> to vector<128xf32>
    %14 = vector.shape_cast %13 : vector<128xf32> to vector<1x128xf32>
    %15 = arith.addf %12, %14 : vector<1x128xf32>
    %c0_11 = arith.constant 0 : index
    %c0_12 = arith.constant 0 : index
    %16 = vector.load %arg6[%c0_11, %c0_12] : memref<1x128xf32, #tpu.memory_space<vmem>>, vector<1x128xf32>
    tpu.vector_store %arg6[%c0_11, %c0_12], %15 {strides = array<i32>} : memref<1x128xf32, #tpu.memory_space<vmem>>, vector<1x128xf32>,
    %c1_i32 = arith.constant 1 : i32
    %17 = arith.cmpi eq, %arg1, %c1_i32 : i32
    %18 = arith.extui %17 : i1 to i32
    %c0_i32_13 = arith.constant 0 : i32
    %19 = arith.cmpi ne, %18, %c0_i32_13 : i32
    scf.if %19 {
      %c0_14 = arith.constant 0 : index
      %c0_15 = arith.constant 0 : index
      %20 = vector.load %arg6[%c0_14, %c0_15] : memref<1x128xf32, #tpu.memory_space<vmem>>, vector<1x128xf32>
      %cst_16 = arith.constant 3.906250e-03 : f32
      %21 = vector.broadcast %cst_16 : f32 to vector<1x128xf32>
      %22 = arith.mulf %20, %21 : vector<1x128xf32>
      %23 = vector.shape_cast %22 : vector<1x128xf32> to vector<1x1x128xf32>
      %24 = vector.shape_cast %23 : vector<1x1x128xf32> to vector<1x1x128xf32>
      %25 = vector.broadcast %24 : vector<1x1x128xf32> to vector<1x8x128xf32>
      %c0_17 = arith.constant 0 : index
      %c0_18 = arith.constant 0 : index
      %c0_19 = arith.constant 0 : index
      %26 = vector.load %arg5[%c0_17, %c0_18, %c0_19] : memref<1x8x128xf32, #tpu.memory_space<vmem>>, vector<1x8x128xf32>
      tpu.vector_store %arg5[%c0_17, %c0_18, %c0_19], %25 {strides = array<i32>} : memref<1x8x128xf32, #tpu.memory_space<vmem>>, vector<1x8x128xf32>,
    } else {
    }
    return
  }
  func.func @transform_0(%arg0: i32, %arg1: i32) -> (i32, i32, i32) {
    %c0_i32 = arith.constant 0 : i32
    %c0_i32_0 = arith.constant 0 : i32
    return %arg0, %arg1, %c0_i32 : i32, i32, i32
  }
  func.func @transform_1(%arg0: i32, %arg1: i32) -> (i32, i32) {
    %c0_i32 = arith.constant 0 : i32
    %c0_i32_0 = arith.constant 0 : i32
    %c0_i32_1 = arith.constant 0 : i32
    return %c0_i32, %c0_i32_0 : i32, i32
  }
  func.func @transform_2(%arg0: i32, %arg1: i32) -> (i32, i32) {
    %c0_i32 = arith.constant 0 : i32
    %c0_i32_0 = arith.constant 0 : i32
    %c0_i32_1 = arith.constant 0 : i32
    return %c0_i32, %c0_i32_0 : i32, i32
  }
  func.func @transform_3(%arg0: i32, %arg1: i32) -> (i32, i32, i32) {
    %c0_i32 = arith.constant 0 : i32
    %c0_i32_0 = arith.constant 0 : i32
    %c0_i32_1 = arith.constant 0 : i32
    return %arg0, %c0_i32, %c0_i32_0 : i32, i32, i32
  }
}

module attributes {stable_mosaic.version = 11 : i64} {
  func.func @linear_bn_kernel(%arg0: i32, %arg1: memref<2x128xf32, #tpu.memory_space<vmem>>, %arg2: memref<128x128xf32, #tpu.memory_space<vmem>>, %arg3: memref<1x128xf32, #tpu.memory_space<vmem>>, %arg4: memref<1x128xf32, #tpu.memory_space<vmem>>, %arg5: memref<1x128xf32, #tpu.memory_space<vmem>>, %arg6: memref<2x128xf32, #tpu.memory_space<vmem>>) attributes {dimension_semantics = [#tpu.dimension_semantics<arbitrary>], iteration_bounds = array<i64: 1>, scalar_prefetch = 0 : i64, scratch_operands = 0 : i64, tpu.core_type = #tpu.core_type<tc>, window_params = [{pipeline_mode = #tpu.pipeline_mode<synchronous>, transform_indices = @transform_0, window_bounds = array<i64: 2, 128>}, {pipeline_mode = #tpu.pipeline_mode<synchronous>, transform_indices = @transform_1, window_bounds = array<i64: 128, 128>}, {pipeline_mode = #tpu.pipeline_mode<synchronous>, transform_indices = @transform_2, window_bounds = array<i64: 1, 128>}, {pipeline_mode = #tpu.pipeline_mode<synchronous>, transform_indices = @transform_3, window_bounds = array<i64: 1, 128>}, {pipeline_mode = #tpu.pipeline_mode<synchronous>, transform_indices = @transform_4, window_bounds = array<i64: 1, 128>}, {pipeline_mode = #tpu.pipeline_mode<synchronous>, transform_indices = @transform_5, window_bounds = array<i64: 2, 128>}]} {
    %c0 = arith.constant 0 : index
    %c0_0 = arith.constant 0 : index
    %0 = vector.load %arg1[%c0, %c0_0] : memref<2x128xf32, #tpu.memory_space<vmem>>, vector<2x128xf32>
    %c0_1 = arith.constant 0 : index
    %c0_2 = arith.constant 0 : index
    %1 = vector.load %arg2[%c0_1, %c0_2] : memref<128x128xf32, #tpu.memory_space<vmem>>, vector<128x128xf32>
    %cst = arith.constant dense<0.000000e+00> : vector<2x128xf32>
    %2 = tpu.matmul %0, %1, %cst {dimension_numbers = #tpu.dot_dimension_numbers<[1], [0], [0], [1], [0, 0, 1, 1], [], []>} : vector<2x128xf32>, vector<128x128xf32>, vector<2x128xf32> -> vector<2x128xf32>
    %c0_3 = arith.constant 0 : index
    %c0_4 = arith.constant 0 : index
    %3 = vector.load %arg3[%c0_3, %c0_4] : memref<1x128xf32, #tpu.memory_space<vmem>>, vector<1x128xf32>
    %4 = vector.broadcast %3 : vector<1x128xf32> to vector<2x128xf32>
    %5 = arith.addf %2, %4 : vector<2x128xf32>
    %cst_5 = arith.constant dense<0.000000e+00> : vector<128xf32>
    %6 = vector.multi_reduction <add>, %5, %cst_5 [0] : vector<2x128xf32> to vector<128xf32>
    %7 = vector.shape_cast %6 : vector<128xf32> to vector<1x128xf32>
    %cst_6 = arith.constant 2.000000e+00 : f32
    %8 = vector.broadcast %cst_6 : f32 to vector<1x128xf32>
    %9 = arith.divf %7, %8 : vector<1x128xf32>
    %10 = vector.broadcast %9 : vector<1x128xf32> to vector<2x128xf32>
    %11 = arith.subf %5, %10 : vector<2x128xf32>
    %12 = arith.mulf %11, %11 : vector<2x128xf32>
    %cst_7 = arith.constant dense<0.000000e+00> : vector<128xf32>
    %13 = vector.multi_reduction <add>, %12, %cst_7 [0] : vector<2x128xf32> to vector<128xf32>
    %14 = vector.shape_cast %13 : vector<128xf32> to vector<1x128xf32>
    %cst_8 = arith.constant 2.000000e+00 : f32
    %15 = vector.broadcast %cst_8 : f32 to vector<1x128xf32>
    %16 = arith.divf %14, %15 : vector<1x128xf32>
    %17 = vector.broadcast %9 : vector<1x128xf32> to vector<2x128xf32>
    %18 = arith.subf %5, %17 : vector<2x128xf32>
    %cst_9 = arith.constant 9.99999974E-6 : f32
    %19 = vector.broadcast %cst_9 : f32 to vector<1x128xf32>
    %20 = arith.addf %16, %19 : vector<1x128xf32>
    %21 = math.rsqrt %20 : vector<1x128xf32>
    %22 = vector.broadcast %21 : vector<1x128xf32> to vector<2x128xf32>
    %23 = arith.mulf %18, %22 : vector<2x128xf32>
    %c0_10 = arith.constant 0 : index
    %c0_11 = arith.constant 0 : index
    %24 = vector.load %arg4[%c0_10, %c0_11] : memref<1x128xf32, #tpu.memory_space<vmem>>, vector<1x128xf32>
    %25 = vector.broadcast %24 : vector<1x128xf32> to vector<2x128xf32>
    %26 = arith.mulf %25, %23 : vector<2x128xf32>
    %c0_12 = arith.constant 0 : index
    %c0_13 = arith.constant 0 : index
    %27 = vector.load %arg5[%c0_12, %c0_13] : memref<1x128xf32, #tpu.memory_space<vmem>>, vector<1x128xf32>
    %28 = vector.broadcast %27 : vector<1x128xf32> to vector<2x128xf32>
    %29 = arith.addf %26, %28 : vector<2x128xf32>
    %c0_14 = arith.constant 0 : index
    %c0_15 = arith.constant 0 : index
    %30 = vector.load %arg6[%c0_14, %c0_15] : memref<2x128xf32, #tpu.memory_space<vmem>>, vector<2x128xf32>
    tpu.vector_store %arg6[%c0_14, %c0_15], %29 {strides = array<i32>} : memref<2x128xf32, #tpu.memory_space<vmem>>, vector<2x128xf32>,
    return
  }
  func.func @transform_0(%arg0: i32) -> (i32, i32) {
    %c0_i32 = arith.constant 0 : i32
    %c0_i32_0 = arith.constant 0 : i32
    %c0_i32_1 = arith.constant 0 : i32
    return %c0_i32, %c0_i32_0 : i32, i32
  }
  func.func @transform_1(%arg0: i32) -> (i32, i32) {
    %c0_i32 = arith.constant 0 : i32
    %c0_i32_0 = arith.constant 0 : i32
    %c0_i32_1 = arith.constant 0 : i32
    return %c0_i32, %c0_i32_0 : i32, i32
  }
  func.func @transform_2(%arg0: i32) -> (i32, i32) {
    %c0_i32 = arith.constant 0 : i32
    %c0_i32_0 = arith.constant 0 : i32
    %c0_i32_1 = arith.constant 0 : i32
    return %c0_i32, %c0_i32_0 : i32, i32
  }
  func.func @transform_3(%arg0: i32) -> (i32, i32) {
    %c0_i32 = arith.constant 0 : i32
    %c0_i32_0 = arith.constant 0 : i32
    %c0_i32_1 = arith.constant 0 : i32
    return %c0_i32, %c0_i32_0 : i32, i32
  }
  func.func @transform_4(%arg0: i32) -> (i32, i32) {
    %c0_i32 = arith.constant 0 : i32
    %c0_i32_0 = arith.constant 0 : i32
    %c0_i32_1 = arith.constant 0 : i32
    return %c0_i32, %c0_i32_0 : i32, i32
  }
  func.func @transform_5(%arg0: i32) -> (i32, i32) {
    %c0_i32 = arith.constant 0 : i32
    %c0_i32_0 = arith.constant 0 : i32
    %c0_i32_1 = arith.constant 0 : i32
    return %c0_i32, %c0_i32_0 : i32, i32
  }
}

</mosaic_0001>

<bundles_post_ra>
// kernel: enc_forward.3
= control target key start
LH: loop header
LB: loop body
LE: loop exit
PB: predicated region body
PF: predicated region fallthrough
CT: control target
= control target key end

     0   :  { %v278_v3 = vmov 0.0|0.0   ;;  %vm279_vm0 = vmmov 0   ;;  %v280_v6 = vmov 0.0   ;;  %s384_s0 = inlined_call_operand.vmem [shape: f32[2,128], index: 0, kind: input, shape index: {}]   ;;  %s385_s1 = inlined_call_operand.vmem [shape: f32[128,128], index: 1, kind: input, shape index: {}]   ;;  %s386_s2 = inlined_call_operand.vmem [shape: f32[1,128], index: 2, kind: input, shape index: {}]   ;;  %s387_s3 = inlined_call_operand.vmem [shape: f32[1,128], index: 3, kind: input, shape index: {}]   ;;  %s388_s4 = inlined_call_operand.vmem [shape: f32[1,128], index: 4, kind: input, shape index: {}]   ;;  %s389_s5 = inlined_call_operand.hbm [shape: f32[2,128], index: 5, kind: output, shape index: {}]  }
   0x1   :  { %v22_v0 = vld [vmem:[%s385_s1] sm:$0xff]  ;;  %v23_v1 = vld [vmem:[%s385_s1 + $0x8] sm:$0xff]  ;;  %v24_v2 = vld [vmem:[%s385_s1 + $0x10] sm:$0xff]  ;;  %224 = vmatprep.subr.bf16.mxu0 %v278_v3  ;;  %221 = vmatprep.mubr.msk.f32.mxu0 %vm279_vm0, %v280_v6 }
   0x2   :  { %v225_v4 = vpack.c.bf16 %v23_v1, %v22_v0  ;;  %v25_v5 = vld [vmem:[%s385_s1 + $0x18] sm:$0xff]  ;;  %v26_v8 = vld [vmem:[%s385_s1 + $0x20] sm:$0xff]  ;;  %v27_v9 = vld [vmem:[%s385_s1 + $0x28] sm:$0xff] }
   0x3   :  { %v228_v7 = vpack.c.bf16 %v25_v5, %v24_v2 }
   0x4   :  { %226 = vmatpush3.bf16.msra.mxu0 %v225_v4 }
   0x5   :  { %227 = vmatprep.subr.bf16.mxu0 %v278_v3 }
   0x6   :  { %10 = vsyncpa [#allocation3], 0  ;;  %v231_v10 = vpack.c.bf16 %v27_v9, %v26_v8  ;;  %v28_v11 = vld [vmem:[%s385_s1 + $0x30] sm:$0xff]  ;;  %v29_v12 = vld [vmem:[%s385_s1 + $0x38] sm:$0xff]  ;;  %vm115_vm1 = vcmask 1041408   ;;  %s281_s30 = smov [#allocation2]  }
   0x7   :  { %v234_v13 = vpack.c.bf16 %v29_v12, %v28_v11  ;;  %v30_v14 = vld [vmem:[%s385_s1 + $0x40] sm:$0xff]  ;;  %v31_v15 = vld [vmem:[%s385_s1 + $0x48] sm:$0xff]  ;;  %v32_v17 = vld [vmem:[%s385_s1 + $0x50] sm:$0xff]  ;;  %s161_s6 = sshll.u32 %s281_s30, 4  ;;  %s162_s6 = int_to_ptr.vmem [resolvable:$true] %s161_s6 }
   0x8   :  { %229 = vmatpush3.bf16.msra.mxu0 %v228_v7  ;;  %v237_v16 = vpack.c.bf16 %v31_v15, %v30_v14  ;;  %v33_v18 = vld [vmem:[%s385_s1 + $0x58] sm:$0xff]  ;;  %v34_v20 = vld [vmem:[%s385_s1 + $0x60] sm:$0xff]  ;;  %v35_v21 = vld [vmem:[%s385_s1 + $0x68] sm:$0xff]  ;;  %s254_s7 = scalar_lea.vmem %s162_s6, 32  ;;  %p259_p1 = scmp.lt.s32.totalorder %s162_s6, %s162_s6 }
   0x9   :  { %230 = vmatprep.subr.bf16.mxu0 %v278_v3  ;;  %v240_v19 = vpack.c.bf16 %v33_v18, %v32_v17  ;;  %v243_v22 = vpack.c.bf16 %v35_v21, %v34_v20  ;;  %v36_v23 = vld [vmem:[%s385_s1 + $0x70] sm:$0xff]  ;;  %v37_v24 = vld [vmem:[%s385_s1 + $0x78] sm:$0xff]  ;;  %v21_v26 = vld [vmem:[%s384_s0] sm:$0x3]  ;;  %p255_p0 = scmp.ne.s32.totalorder %s162_s6, %s254_s7  ;;  %p260_p2 = scmp.lt.s32.totalorder %s254_s7, %s254_s7 }
   0xa   :  { %v246_v25 = vpack.c.bf16 %v37_v24, %v36_v23  ;;  %v169_v27 = vld [vmem:[%s386_s2] ss:$0 sm:$0xff] }
   0xb   :  { %v170_v51 = vld [vmem:[%s387_s3] ss:$0 sm:$0xff]  ;;  %p261_p3 = por %p260_p2, %p259_p1 }
   0xc   :  { %232 = vmatpush3.bf16.msra.mxu0 %v231_v10  ;;  %v171_v53 = vld [vmem:[%s388_s4] ss:$0 sm:$0xff] }
   0xd   :  { %233 = vmatprep.subr.bf16.mxu0 %v278_v3  ;;  %p262_p4 = pnand %p261_p3, %p255_p0 }
  0x10   :  { %235 = vmatpush3.bf16.msra.mxu0 %v234_v13 }
  0x11   :  { %236 = vmatprep.subr.bf16.mxu0 %v278_v3 }
  0x14   :  { %238 = vmatpush3.bf16.msra.mxu0 %v237_v16 }
  0x15   :  { %239 = vmatprep.subr.bf16.mxu0 %v278_v3 }
  0x18   :  { %241 = vmatpush3.bf16.msra.mxu0 %v240_v19 }
  0x19   :  { %242 = vmatprep.subr.bf16.mxu0 %v278_v3 }
  0x1c   :  { %244 = vmatpush3.bf16.msra.mxu0 %v243_v22 }
  0x1d   :  { %245 = vmatprep.subr.bf16.mxu0 %v278_v3 }
  0x20   :  { %247 = vmatpush3.bf16.msra.mxu0 %v246_v25 }
  0x23   :  { %222 = vmatmul.mubr.f32.vlgmr.msra.gmra.mrb[0].mxu0 %v21_v26 }
  0xf6   :  { %v111_v28 = vpop.f32.mrb[0].mxu0 }
  0xf7   :  { %v112_v29 = vadd.f32 %v169_v27, %v111_v28  ;;  %v223_v30 = vpop.f32.mrb[1].mxu0 }
  0xf9   :  { %v116_v31 = vsel %vm115_vm1, %v112_v29, 0.0 }
  0xfa   :  { %v117_v32 = vrot.slane %v116_v31, 4 }
  0xfc   :  { %v118_v33 = vadd.f32 %v117_v32, %v116_v31 }
  0xfe   :  { %v119_v34 = vrot.slane %v118_v33, 2 }
 0x100   :  { %v120_v35 = vadd.f32 %v119_v34, %v118_v33 }
 0x102   :  { %v121_v36 = vrot.slane %v120_v35, 1 }
 0x104   :  { %v122_v37 = vadd.f32 %v121_v36, %v120_v35 }
 0x106   :  { %v124_v38 = vmul.f32 0.5, %v122_v37 }
 0x108   :  { %v125_v39 = vsub.f32 %v112_v29, %v124_v38 }
 0x10a   :  { %v126_v40 = vmul.f32 %v125_v39, %v125_v39 }
 0x10c   :  { %v127_v41 = vsel %vm115_vm1, %v126_v40, 0.0 }
 0x10d   :  { %v128_v42 = vrot.slane %v127_v41, 4 }
 0x10f   :  { %v129_v43 = vadd.f32 %v128_v42, %v127_v41 }
 0x111   :  { %v130_v44 = vrot.slane %v129_v43, 2 }
 0x113   :  { %v131_v45 = vadd.f32 %v130_v44, %v129_v43 }
 0x115   :  { %v132_v46 = vrot.slane %v131_v45, 1 }
 0x117   :  { %v133_v47 = vadd.f32 %v132_v46, %v131_v45 }
 0x119   :  { %v134_v48 = vmul.f32 0.5, %v133_v47 }
 0x11b   :  { %v135_v49 = vadd.f32 1e-05, %v134_v48 }
 0x11d   :  { %252 = vrsqrt.f32 %v135_v49 }
 0x127   :  { %v253_v50 = vpop.eup %252 }
 0x128   :  { %v137_v52 = vmul.f32 %v253_v50, %v125_v39 }
 0x12a   :  { %v145_v54 = vmul.f32 %v170_v51, %v137_v52 }
 0x12c   :  { %v153_v55 = vadd.f32 %v171_v53, %v145_v54 }
 0x12e   :  { %154 = vst [vmem:[#allocation2] sm:$0x3] %v153_v55 }
 0x12f   :  { %265 = shalt.err (!%p262_p4)
}
 0x130   :  { %s266_s9 = scalar_lea.hbm %s389_s5, 32 }
 0x131   :  { %p267_p5 = scmp.ne.s32.totalorder %s389_s5, %s266_s9  ;;  %p270_p6 = scmp.lt.u32.totalorder %s266_s9, %s389_s5 }
 0x133   :  { %p272_p7 = pnand %p270_p6, %p267_p5 }
 0x135   :  { %275 = shalt.err (!%p272_p7)
}
 0x136   :  { %164 = dma.vmem_to_hbm [thread:$0]  %s162_s6, 32, %s389_s5, [#allocation3]  }
 0x137   :  { %276 = dma.done.wait [#allocation3], 32  }
 0x138   :  { %277 = vsyncadd [#allocation3], 4294967264 }
 0x139   :  { %168 = vsyncpa [#allocation3], 1 }

// kernel: enc_forward.2
= control target key start
LH: loop header
LB: loop body
LE: loop exit
PB: predicated region body
PF: predicated region fallthrough
CT: control target
= control target key end

     0   :  { %s770_s12 = smov 0   ;;  %s772_s13 = smov 0   ;;  %s866_s0 = inlined_call_operand.vmem [shape: bf16[2,256,128], index: 0, kind: input, shape index: {}]   ;;  %s867_s1 = inlined_call_operand.vmem [shape: bf16[128,128], index: 1, kind: input, shape index: {}]   ;;  %s868_s2 = inlined_call_operand.vmem [shape: f32[1,128], index: 2, kind: input, shape index: {}]   ;;  %s869_s3 = inlined_call_operand.vmem [shape: f32[2,8,128], index: 3, kind: output, shape index: {}]  }
   0x1   :  { %s774_s14 = smov 0   ;;  %s776_s15 = smov 0  }
   0x2   :  { %s778_s16 = smov 0  }
   0x3 LB: > { %s22_s17 = sadd.s32 1, %s739_s14  ;;  %s25_s18 = sadd.s32 1, %s743_s15  ;;  %s747_s16 = sphi %s778_s16, %s13_s16   ;;  %s743_s15 = sphi %s776_s15, %s873_s15   ;;  %s739_s14 = sphi %s774_s14, %s872_s14   ;;  %s735_s13 = sphi %s772_s13, %s871_s13   ;;  %s731_s12 = sphi %s770_s12, %s870_s12  }
   0x4   : > { %p23_p0 = scmp.ge.s32.totalorder %s22_s17, 2  ;;  %p562_p1 = scmp.ge.s32.totalorder %s747_s16, 1 }
   0x5   : > { %p156_p2 = scmp.lt.s32.totalorder %s747_s16, 5 }
   0x6   : > { %s875_s17 = smov (%p23_p0, %s22_s17), 0  ;;  %s877_s18 = smov (!%p23_p0, %s25_s18), %s743_s15 }
   0x7   : > { %p157_p3 = pnand %p562_p1, %p156_p2  ;;  %p27_p4 = scmp.ge.s32.totalorder %s877_s18, 2 }
   0x8   : > { %s563_s19 = sshll.u32 (!%p157_p3), %s731_s12, 4  ;;  %p184_p5 = scmp.lt.s32.totalorder (!%p157_p3), %s735_s13, 1 }
   0x9   : > { %s879_s18 = smov (%p27_p4, %s877_s18), 0  ;;  %160 = sbr.rel (%p157_p3) target bundleno = 335 (0x14f), region = 32 }
   0xa   : > { %p186_p6 = scmp.lt.s32.totalorder (!%p157_p3), %s563_s19, 31  ;;  %p567_p7 = scmp.ne.s32.totalorder (!%p157_p3), %s731_s12, 0 }
  0x10   : > { %s881_s13 = smov (!%p184_p5, %s735_s13), 1  ;;  %s883_s19 = smov (!%p186_p6, %s563_s19), 31 }
  0x11   : > { %s564_s20 = sshll.u32 %s881_s13, 5  ;;  %s566_s21 = sshll.u32 %s881_s13, 3  ;;  %v749_v0 = vmov (!%p567_p7), 0.0  }
  0x12   : > { %s189_s22 = sadd.s32 %s564_s20, %s883_s19  ;;  %s806_s25 = scalar_lea.vmem %s869_s3, %s566_s21  ;;  %202 = vst [vmem:[#allocation2] sm:$0x1] (!%p567_p7), %v749_v0 }
  0x13   : > { %s565_s26 = sshll.u32 %s189_s22, 2  ;;  %201 = sbr.rel (%p567_p7) target bundleno = 26 (0x1a), region = 36 }
  0x14   : > { %s811_s29 = scalar_lea.vmem %s866_s0, %s565_s26 }
  0x1a PF: > { %v693_v1 = vld [vmem:[%s867_s1] sm:$0xff]   ;;  %v694_v2 = vld [vmem:[%s867_s1 + $0x8] sm:$0xff]   ;;  %v695_v3 = vld [vmem:[%s867_s1 + $0x10] sm:$0xff]   ;;  %p585_p8 = scmp.ne.s32.totalorder %s731_s12, 1 }
  0x1b   : > { %604 = vmatprep.subr.bf16.mxu0 %v693_v1  ;;  %636 = vmatprep.subr.bf16.mxu1 %v693_v1  ;;  %v696_v4 = vld [vmem:[%s867_s1 + $0x18] sm:$0xff]   ;;  %v701_v5 = vld [vmem:[%s811_s29] sm:$0xff]   ;;  %v698_v8 = vld [vmem:[%s867_s1 + $0x28] sm:$0xff]  }
  0x1c   : > { %605 = vmatpush3.bf16.msra.mxu0 %v693_v1  ;;  %644 = vmatpush3.bf16.msra.mxu1 %v693_v1  ;;  %v697_v6 = vld [vmem:[%s867_s1 + $0x20] sm:$0xff]   ;;  %v699_v9 = vld [vmem:[%s867_s1 + $0x30] sm:$0xff]   ;;  %v700_v10 = vld [vmem:[%s867_s1 + $0x38] sm:$0xff]  }
  0x1d   : > { %606 = vmatprep.subr.bf16.mxu0 %v694_v2  ;;  %637 = vmatprep.subr.bf16.mxu1 %v694_v2  ;;  %v705_v7 = vld [vmem:[%s811_s29 + $0x20] sm:$0xff]   ;;  %v702_v11 = vld [vmem:[%s811_s29 + $0x8] sm:$0xff]   ;;  %v703_v13 = vld [vmem:[%s811_s29 + $0x10] sm:$0xff]  }
  0x1e   : > { %620 = vmatprep.mubr.bf16.mxu0 %v701_v5  ;;  %628 = vmatprep.mubr.bf16.mxu1 %v705_v7  ;;  %v706_v12 = vld [vmem:[%s811_s29 + $0x28] sm:$0xff]   ;;  %v707_v14 = vld [vmem:[%s811_s29 + $0x30] sm:$0xff]   ;;  %v704_v15 = vld [vmem:[%s811_s29 + $0x18] sm:$0xff]  }
  0x1f   : > { %v708_v16 = vld [vmem:[%s811_s29 + $0x38] sm:$0xff]   ;;  %v568_v17 = vld [vmem:[%s868_s2] ss:$0 sm:$0xff] }
  0x20   : > { %607 = vmatpush3.bf16.msra.mxu0 %v694_v2  ;;  %645 = vmatpush3.bf16.msra.mxu1 %v694_v2 }
  0x21   : > { %608 = vmatprep.subr.bf16.mxu0 %v695_v3  ;;  %638 = vmatprep.subr.bf16.mxu1 %v695_v3 }
  0x24   : > { %609 = vmatpush3.bf16.msra.mxu0 %v695_v3  ;;  %646 = vmatpush3.bf16.msra.mxu1 %v695_v3 }
  0x25   : > { %610 = vmatprep.subr.bf16.mxu0 %v696_v4  ;;  %639 = vmatprep.subr.bf16.mxu1 %v696_v4 }
  0x28   : > { %611 = vmatpush3.bf16.msra.mxu0 %v696_v4  ;;  %647 = vmatpush3.bf16.msra.mxu1 %v696_v4 }
  0x29   : > { %612 = vmatprep.subr.bf16.mxu0 %v697_v6  ;;  %640 = vmatprep.subr.bf16.mxu1 %v697_v6 }
  0x2c   : > { %613 = vmatpush3.bf16.msra.mxu0 %v697_v6  ;;  %648 = vmatpush3.bf16.msra.mxu1 %v697_v6 }
  0x2d   : > { %614 = vmatprep.subr.bf16.mxu0 %v698_v8  ;;  %641 = vmatprep.subr.bf16.mxu1 %v698_v8 }
  0x30   : > { %615 = vmatpush3.bf16.msra.mxu0 %v698_v8  ;;  %649 = vmatpush3.bf16.msra.mxu1 %v698_v8 }
  0x31   : > { %616 = vmatprep.subr.bf16.mxu0 %v699_v9  ;;  %642 = vmatprep.subr.bf16.mxu1 %v699_v9 }
  0x34   : > { %617 = vmatpush3.bf16.msra.mxu0 %v699_v9  ;;  %650 = vmatpush3.bf16.msra.mxu1 %v699_v9 }
  0x35   : > { %618 = vmatprep.subr.bf16.mxu0 %v700_v10  ;;  %643 = vmatprep.subr.bf16.mxu1 %v700_v10 }
  0x38   : > { %619 = vmatpush3.bf16.msra.mxu0 %v700_v10  ;;  %651 = vmatpush3.bf16.msra.mxu1 %v700_v10 }
  0x3b   : > { %621 = vmatmul.mubr.bf16.vlgmr.msra.gmra.mrb[0].mxu0 %v702_v11  ;;  %629 = vmatmul.mubr.bf16.vlgmr.msra.gmra.mrb[0].mxu1 %v706_v12 }
  0x3c   : > { %624 = vmatprep.mubr.bf16.mxu0 %v703_v13  ;;  %632 = vmatprep.mubr.bf16.mxu1 %v707_v14 }
  0x43   : > { %625 = vmatmul.mubr.bf16.gmra.mrb[4].mxu0 %v704_v15  ;;  %633 = vmatmul.mubr.bf16.gmra.mrb[4].mxu1 %v708_v16 }
 0x10e   : > { %v622_v18 = vpop.f32.mrb[0].mxu0  ;;  %v630_v19 = vpop.f32.mrb[0].mxu1 }
 0x10f   : > { %v372_v20 = vpop.f32.mrb[1].mxu0  ;;  %v404_v21 = vpop.f32.mrb[1].mxu1  ;;  %v381_v27 = vadd.f32 %v622_v18, %v568_v17  ;;  %v413_v59 = vadd.f32 %v630_v19, %v568_v17 }
 0x110   : > { %v373_v22 = vadd.f32 %v568_v17, %v372_v20  ;;  %v623_v23 = vpop.f32.mrb[2].mxu0  ;;  %v631_v24 = vpop.f32.mrb[2].mxu1  ;;  %v405_v52 = vadd.f32 %v568_v17, %v404_v21 }
 0x111   : > { %v375_v25 = vpop.f32.mrb[3].mxu0  ;;  %v407_v26 = vpop.f32.mrb[3].mxu1  ;;  %v384_v30 = vadd.f32 %v623_v23, %v568_v17  ;;  %v437_v32 = vmax.f32 %v381_v27, 0.0  ;;  %v416_v62 = vadd.f32 %v631_v24, %v568_v17  ;;  %v445_v1 = vmax.f32 %v413_v59, 0.0  ;;  %v451_v23 = vld [vmem:[#allocation2] sm:$0x1] }
 0x112   : > { %v376_v28 = vadd.f32 %v568_v17, %v375_v25  ;;  %v435_v29 = vmax.f32 %v373_v22, 0.0  ;;  %v443_v57 = vmax.f32 %v405_v52, 0.0  ;;  %v408_v58 = vadd.f32 %v568_v17, %v407_v26 }
 0x113   : > { %v438_v38 = vmax.f32 %v384_v30, 0.0  ;;  %v446_v3 = vmax.f32 %v416_v62, 0.0 }
 0x114   : > { %v436_v31 = vmax.f32 %v376_v28, 0.0  ;;  %v444_v63 = vmax.f32 %v408_v58, 0.0 }
 0x116   : > { %v452_v33 = vadd.f32 %v436_v31, %v435_v29  ;;  %v626_v34 = vpop.f32.mrb[4].mxu0  ;;  %v634_v35 = vpop.f32.mrb[4].mxu1 }
 0x117   : > { %v388_v36 = vpop.f32.mrb[5].mxu0  ;;  %v420_v37 = vpop.f32.mrb[5].mxu1  ;;  %v397_v45 = vadd.f32 %v626_v34, %v568_v17  ;;  %v429_v7 = vadd.f32 %v634_v35, %v568_v17 }
 0x118   : > { %v453_v39 = vadd.f32 %v452_v33, %v437_v32  ;;  %v389_v40 = vadd.f32 %v568_v17, %v388_v36  ;;  %v627_v41 = vpop.f32.mrb[6].mxu0  ;;  %v635_v42 = vpop.f32.mrb[6].mxu1  ;;  %v421_v0 = vadd.f32 %v568_v17, %v420_v37 }
 0x119   : > { %v391_v43 = vpop.f32.mrb[7].mxu0  ;;  %v423_v44 = vpop.f32.mrb[7].mxu1  ;;  %v400_v50 = vadd.f32 %v627_v41, %v568_v17  ;;  %v441_v53 = vmax.f32 %v397_v45, 0.0  ;;  %v432_v10 = vadd.f32 %v635_v42, %v568_v17  ;;  %v449_v12 = vmax.f32 %v429_v7, 0.0 }
 0x11a   : > { %v439_v46 = vmax.f32 %v389_v40, 0.0  ;;  %v454_v47 = vadd.f32 %v453_v39, %v438_v38  ;;  %v392_v48 = vadd.f32 %v568_v17, %v391_v43  ;;  %v447_v5 = vmax.f32 %v421_v0, 0.0 }
 0x11b   : > { %v442_v55 = vmax.f32 %v400_v50, 0.0  ;;  %v424_v6 = vadd.f32 %v568_v17, %v423_v44  ;;  %v450_v14 = vmax.f32 %v432_v10, 0.0  ;;  %v482_v17 = vlaneseq (!%p585_p8) }
 0x11c   : > { %v455_v49 = vadd.f32 %v454_v47, %v439_v46  ;;  %v440_v51 = vmax.f32 %v392_v48, 0.0 }
 0x11d   : > { %v448_v11 = vmax.f32 %v424_v6, 0.0  ;;  %v483_v28 = vshrl.u32 (!%p585_p8), %v482_v17, 7 }
 0x11e   : > { %v456_v54 = vadd.f32 %v455_v49, %v440_v51 }
 0x11f   : > { %v484_v29 = vsub.s32 (!%p585_p8), 0, %v483_v28 }
 0x120   : > { %v457_v56 = vadd.f32 %v456_v54, %v441_v53 }
 0x122   : > { %v458_v60 = vadd.f32 %v457_v56, %v442_v55 }
 0x124   : > { %v459_v61 = vadd.f32 %v458_v60, %v443_v57 }
 0x126   : > { %v460_v2 = vadd.f32 %v459_v61, %v444_v63 }
 0x128   : > { %v461_v4 = vadd.f32 %v460_v2, %v445_v1 }
 0x12a   : > { %v462_v8 = vadd.f32 %v461_v4, %v446_v3 }
 0x12c   : > { %v463_v9 = vadd.f32 %v462_v8, %v447_v5 }
 0x12e   : > { %v464_v13 = vadd.f32 %v463_v9, %v448_v11 }
 0x130   : > { %v465_v15 = vadd.f32 %v464_v13, %v449_v12 }
 0x132   : > { %v466_v16 = vadd.f32 %v465_v15, %v450_v14 }
 0x134   : > { %v467_v18 = vrot.slane %v466_v16, 4 }
 0x136   : > { %v468_v19 = vadd.f32 %v467_v18, %v466_v16 }
 0x138   : > { %v469_v20 = vrot.slane %v468_v19, 2 }
 0x13a   : > { %v470_v21 = vadd.f32 %v469_v20, %v468_v19 }
 0x13c   : > { %v471_v22 = vrot.slane %v470_v21, 1  ;;  %478 = sbr.rel (%p585_p8) target bundleno = 335 (0x14f), region = 40 }
 0x13e   : > { %v472_v24 = vadd.f32 %v471_v22, %v470_v21 }
 0x140   : > { %v473_v25 = vadd.f32 %v472_v24, %v451_v23 }
 0x142   : > { %474 = vst [vmem:[#allocation2] sm:$0x1] %v473_v25 }
 0x149   : > { %v479_v26 = vld [vmem:[#allocation2] sm:$0x1] }
 0x14a   : > { %v480_v27 = vmul.f32 0.00390625, %v479_v26 }
 0x14c   : > { %v485_v30 = vrot.slane %v480_v27, %v484_v29 }
 0x14e   : > { %487 = vst [vmem:[%s806_s25] sm:$0xff] %v485_v30 }
 0x14f PF: > { %s13_s16 = sadd.s32 1, %s747_s16   ;;  %s870_s12 = smov %s739_s14 }
 0x150   : > { %p10_p9 = scmp.ge.s32.totalorder %s13_s16, 6   ;;  %s871_s13 = smov %s743_s15 }
 0x151   : > { %s872_s14 = smov %s875_s17  ;;  %s873_s15 = smov %s879_s18 }
 0x152   :  { %12 = sbr.rel (!%p10_p9) target bundleno = 3 (0x3), region = 70 }

</bundles_post_ra>
